<compile_context>
chip_gen: v7x
topology: tpu7x:2x2x1
jax: 0.10.0
libtpu: 0.0.40
codegen_flags: <defaults>
</compile_context>

<pallas_src>
import functools
import math

import jax
import jax.numpy as jnp
from jax.experimental import pallas as pl
from jax.experimental.pallas import tpu as pltpu

EPS = 1e-6
_PAD_LOGIT = -1.0e4            # sentinel logit: exp(-|x|)==0, sigmoid(x)==0, BCE term==0
_TARGET_BLOCK_ELEMS = 1 << 20  # ~4 MiB f32 per input per grid step


def _round_up(x, m):
    return (x + m - 1) // m * m


def _divisors(n):
    small, large = [], []
    i = 1
    while i * i <= n:
        if n % i == 0:
            small.append(i)
            if i != n // i:
                large.append(n // i)
        i += 1
    return small + large[::-1]


def _choose_rows_per_sample(B, N):
    """Pick R (rows per sample, R | N) so rows = B*R packs sublanes well.

    Preference: rows % 8 == 0  >  cols % 128 == 0  >  cols >= 128, then the
    smallest such R (bigger cols leaves more freedom for the lane tile)."""
    best_score, best_r = None, 1
    for R in _divisors(N):
        rows = B * R
        if rows > 4096:
            continue
        cols = N // R
        score = (rows % 8 == 0, cols % 128 == 0, cols >= 128, -R)
        if best_score is None or score > best_score:
            best_score, best_r = score, R
    return best_r


def _choose_tn(cols, tn_max):
    """Lane-tile width: a multiple of 128, <= tn_max.

    Prefers a large 128-multiple divisor of cols (no padding); otherwise uses
    tn_max and the wrapper pads the trailing lanes with sentinels."""
    tn_max = max(128, (tn_max // 128) * 128)
    if cols <= tn_max:
        return _round_up(cols, 128)          # single tile (maybe lane-padded)
    d = tn_max
    while d >= max(128, tn_max // 2):        # only accept a "big enough" divisor
        if cols % d == 0:
            return d
        d -= 128
    return tn_max                            # pad the last tile instead


def _vmem_limit_bytes():
    cap = 64 * 1024 * 1024                   # conservative default (v7x per-TC VMEM)
    try:
        cap = int(pltpu.get_tpu_info().vmem_capacity_bytes)
    except Exception:
        pass
    # Half of physical: 64 MiB on v5e/v6e (128 MiB VMEM), 32 MiB on v7x.
    return max(16 * 1024 * 1024, min(cap // 2, 64 * 1024 * 1024))


def combined_loss_kernel(pred_ref, targ_ref, out_ref,
                         acc_bce, acc_inter, acc_pt,
                         *, batch, rows_per_sample, total_elems):
    k = pl.program_id(0)

    @pl.when(k == 0)
    def _init():
        acc_bce[...] = jnp.zeros_like(acc_bce)
        acc_inter[...] = jnp.zeros_like(acc_inter)
        acc_pt[...] = jnp.zeros_like(acc_pt)

    # Cast to f32 on load (works for f32 / bf16 / int-or-bool targets).
    x = pred_ref[...].astype(jnp.float32)
    t = targ_ref[...].astype(jnp.float32)

    # Shared transcendentals: e = exp(-|x|) feeds both the stable BCE softplus
    # and the sigmoid (one exp + one log1p + one reciprocal per element).
    e = jnp.exp(-jnp.abs(x))                    # EUP exp
    softplus = jnp.log1p(e)                     # EUP log1p -> log(1 + exp(-|x|))
    # Exact reciprocal keeps the 1e-5 tolerance; approx=True (pure EUP vrcp)
    # is a candidate on v7x/v6e once validated against the tolerance.
    inv = pl.reciprocal(1.0 + e)
    p = jnp.where(x >= 0.0, inv, e * inv)       # sigmoid(x)

    # Steady state: pure elementwise VPU accumulation; p and t accumulators
    # are merged since dice only needs sum(p)+sum(t) per sample.
    acc_bce[...] += jnp.maximum(x, 0.0) - x * t + softplus
    acc_inter[...] += p * t
    acc_pt[...] += p + t

    @pl.when(k == pl.num_programs(0) - 1)
    def _finalize():
        # One lane-axis reduction per accumulator, then tiny per-sample
        # grouping on the (rows, 1) results (two-stage sums).
        bce_rows = jnp.sum(acc_bce[...], axis=-1, keepdims=True)
        inter_rows = jnp.sum(acc_inter[...], axis=-1, keepdims=True)
        pt_rows = jnp.sum(acc_pt[...], axis=-1, keepdims=True)

        bce_mean = jnp.sum(bce_rows) / total_elems

        R = rows_per_sample
        dice_sum = jnp.float32(0.0)
        for b in range(batch):  # static, small unrolled loop (epilogue only)
            inter_b = jnp.sum(inter_rows[b * R:(b + 1) * R, :])
            pt_b = jnp.sum(pt_rows[b * R:(b + 1) * R, :])
            dice_sum = dice_sum + (1.0 - (2.0 * inter_b + EPS) / (pt_b + EPS))

        out_ref[...] = (bce_mean + dice_sum / batch)[None, None]


def combined_loss(pred, target, *, max_block_elems=None):
    """BCEWithLogitsLoss + mean Dice loss over (B, C, H, W) inputs.

    pred/target may be any float (or bool/int target) dtype; they stay in
    their native dtype in HBM and are cast to f32 inside the kernel — do NOT
    cast in the caller (bf16 inputs halve HBM traffic on v5e/v6e).
    Returns an f32 scalar.
    """
    B = pred.shape[0]
    N = int(math.prod(pred.shape[1:]))

    R = _choose_rows_per_sample(B, N)
    rows = B * R
    cols = N // R
    rows_p = _round_up(rows, 8)

    vmem_limit = _vmem_limit_bytes()
    # Per (row, lane) element: 2 pipeline buffers per input + 3 f32 accumulators.
    bytes_per_elem = 2 * (pred.dtype.itemsize + target.dtype.itemsize) + 3 * 4
    elems_cap = min(max_block_elems or _TARGET_BLOCK_ELEMS,
                    max(1, int(vmem_limit * 0.75) // bytes_per_elem))
    tn_max = max(128, elems_cap // rows_p)
    tn = _choose_tn(cols, tn_max)
    num_tiles = (cols + tn - 1) // tn
    cols_p = num_tiles * tn

    p2 = pred.reshape(rows, cols)
    t2 = target.reshape(rows, cols)
    if rows_p != rows or cols_p != cols:
        # Sentinel padding: logit = -1e4, target = 0 contribute exactly zero
        # to every accumulator (exp(-1e4)==0 in f32, sigmoid==0, BCE term==0),
        # so no in-kernel masking is needed.  Dice only reads real rows.
        pad = ((0, rows_p - rows), (0, cols_p - cols))
        p2 = jnp.pad(p2, pad, constant_values=_PAD_LOGIT)
        t2 = jnp.pad(t2, pad, constant_values=0)

    vmem_limit = max(vmem_limit, rows_p * tn * bytes_per_elem + 2 * 1024 * 1024)

    kernel = functools.partial(
        combined_loss_kernel,
        batch=B, rows_per_sample=R, total_elems=float(B * N))

    bytes_in = (pred.size * pred.dtype.itemsize
                + target.size * target.dtype.itemsize)

    out = pl.pallas_call(
        kernel,
        out_shape=jax.ShapeDtypeStruct((1, 1), jnp.float32),
        grid=(num_tiles,),
        in_specs=[
            pl.BlockSpec((rows_p, tn), lambda k: (0, k)),
            pl.BlockSpec((rows_p, tn), lambda k: (0, k)),
        ],
        out_specs=pl.BlockSpec((1, 1), lambda k: (0, 0)),
        scratch_shapes=[pltpu.VMEM((rows_p, tn), jnp.float32)
                        for _ in range(3)],
        compiler_params=pltpu.CompilerParams(
            dimension_semantics=("arbitrary",),
            vmem_limit_bytes=int(vmem_limit),
        ),
        cost_estimate=pl.CostEstimate(
            flops=16 * B * N,
            transcendentals=3 * B * N,
            bytes_accessed=bytes_in + 4,
        ),
    )(p2, t2)
    return out[0, 0]


def _reference(pred, target):
    # Pure-JAX reference mirroring the PyTorch module.
    x = pred.astype(jnp.float32)
    t = target.astype(jnp.float32)
    bce = jnp.mean(jnp.maximum(x, 0.0) - x * t + jnp.log1p(jnp.exp(-jnp.abs(x))))
    p = jax.nn.sigmoid(x)
    inter = jnp.sum(p * t, axis=(1, 2, 3))
    denom = jnp.sum(p, axis=(1, 2, 3)) + jnp.sum(t, axis=(1, 2, 3))
    dice = 1.0 - (2.0 * inter + EPS) / (denom + EPS)
    return bce + jnp.mean(dice)


if __name__ == "__main__":
    key = jax.random.PRNGKey(0)
    k1, k2, k3, k4, k5, k6 = jax.random.split(key, 6)

    # Case 1: the spec's small shape (single tile).
    B, C, H, W = 2, 4, 16, 16
    pred = jax.random.normal(k1, (B, C, H, W), dtype=jnp.float32)
    target = (jax.random.uniform(k2, (B, C, H, W)) > 0.5).astype(jnp.float32)
    loss = jax.block_until_ready(combined_loss(pred, target))
    ref = jax.block_until_ready(_reference(pred, target))
    assert jnp.allclose(loss, ref, rtol=1e-5, atol=1e-5), (loss, ref)

    # Case 2: force the multi-tile accumulation path via a small block cap.
    B2, C2, H2, W2 = 2, 4, 32, 32
    pred2 = jax.random.normal(k3, (B2, C2, H2, W2), dtype=jnp.float32)
    target2 = (jax.random.uniform(k4, (B2, C2, H2, W2)) > 0.5).astype(jnp.float32)
    loss2 = jax.block_until_ready(
        combined_loss(pred2, target2, max_block_elems=2048))
    ref2 = jax.block_until_ready(_reference(pred2, target2))
    assert jnp.allclose(loss2, ref2, rtol=1e-5, atol=1e-5), (loss2, ref2)

    # Case 3: awkward shape -> exercises sentinel row + lane padding.
    B3, C3, H3, W3 = 3, 3, 10, 10
    pred3 = jax.random.normal(k5, (B3, C3, H3, W3), dtype=jnp.float32)
    target3 = (jax.random.uniform(k6, (B3, C3, H3, W3)) > 0.5).astype(jnp.float32)
    loss3 = jax.block_until_ready(combined_loss(pred3, target3))
    ref3 = jax.block_until_ready(_reference(pred3, target3))
    assert jnp.allclose(loss3, ref3, rtol=1e-5, atol=1e-5), (loss3, ref3)

    print("KERNEL_OK")
</pallas_src>

<mosaic_0001>
module attributes {stable_mosaic.version = 11 : i64} {
  func.func @combined_loss_kernel(%arg0: i32, %arg1: memref<8x256xf32, #tpu.memory_space<vmem>>, %arg2: memref<8x256xf32, #tpu.memory_space<vmem>>, %arg3: memref<1x1xf32, #tpu.memory_space<vmem>>, %arg4: memref<8x256xf32, #tpu.memory_space<vmem>>, %arg5: memref<8x256xf32, #tpu.memory_space<vmem>>, %arg6: memref<8x256xf32, #tpu.memory_space<vmem>>) attributes {dimension_semantics = [#tpu.dimension_semantics<arbitrary>], iteration_bounds = array<i64: 1>, scalar_prefetch = 0 : i64, scratch_operands = 3 : i64, tpu.core_type = #tpu.core_type<tc>, window_params = [{transform_indices = @transform_0, window_bounds = array<i64: 8, 256>}, {transform_indices = @transform_1, window_bounds = array<i64: 8, 256>}, {pipeline_mode = #tpu.pipeline_mode<synchronous>, transform_indices = @transform_2, window_bounds = array<i64: 1, 1>}]} {
    %c0_i32 = arith.constant 0 : i32
    %0 = arith.cmpi eq, %arg0, %c0_i32 : i32
    %1 = arith.extui %0 : i1 to i32
    %c0_i32_0 = arith.constant 0 : i32
    %2 = arith.cmpi ne, %1, %c0_i32_0 : i32
    scf.if %2 {
      %cst_21 = arith.constant 0.000000e+00 : f32
      %36 = vector.broadcast %cst_21 : f32 to vector<8x256xf32>
      %c0_22 = arith.constant 0 : index
      %c0_23 = arith.constant 0 : index
      %37 = vector.load %arg4[%c0_22, %c0_23] : memref<8x256xf32, #tpu.memory_space<vmem>>, vector<8x256xf32>
      tpu.vector_store %arg4[%c0_22, %c0_23], %36 {strides = array<i32>} : memref<8x256xf32, #tpu.memory_space<vmem>>, vector<8x256xf32>,
      %cst_24 = arith.constant 0.000000e+00 : f32
      %38 = vector.broadcast %cst_24 : f32 to vector<8x256xf32>
      %c0_25 = arith.constant 0 : index
      %c0_26 = arith.constant 0 : index
      %39 = vector.load %arg5[%c0_25, %c0_26] : memref<8x256xf32, #tpu.memory_space<vmem>>, vector<8x256xf32>
      tpu.vector_store %arg5[%c0_25, %c0_26], %38 {strides = array<i32>} : memref<8x256xf32, #tpu.memory_space<vmem>>, vector<8x256xf32>,
      %cst_27 = arith.constant 0.000000e+00 : f32
      %40 = vector.broadcast %cst_27 : f32 to vector<8x256xf32>
      %c0_28 = arith.constant 0 : index
      %c0_29 = arith.constant 0 : index
      %41 = vector.load %arg6[%c0_28, %c0_29] : memref<8x256xf32, #tpu.memory_space<vmem>>, vector<8x256xf32>
      tpu.vector_store %arg6[%c0_28, %c0_29], %40 {strides = array<i32>} : memref<8x256xf32, #tpu.memory_space<vmem>>, vector<8x256xf32>,
    } else {
    }
    %c0 = arith.constant 0 : index
    %c0_1 = arith.constant 0 : index
    %3 = vector.load %arg1[%c0, %c0_1] : memref<8x256xf32, #tpu.memory_space<vmem>>, vector<8x256xf32>
    %c0_2 = arith.constant 0 : index
    %c0_3 = arith.constant 0 : index
    %4 = vector.load %arg2[%c0_2, %c0_3] : memref<8x256xf32, #tpu.memory_space<vmem>>, vector<8x256xf32>
    %5 = math.absf %3 : vector<8x256xf32>
    %cst = arith.constant 0.000000e+00 : f32
    %6 = vector.broadcast %cst : f32 to vector<8x256xf32>
    %7 = arith.subf %6, %5 : vector<8x256xf32>
    %8 = math.exp %7 : vector<8x256xf32>
    %9 = math.log1p %8 : vector<8x256xf32>
    %cst_4 = arith.constant 1.000000e+00 : f32
    %10 = vector.broadcast %cst_4 : f32 to vector<8x256xf32>
    %11 = arith.addf %10, %8 : vector<8x256xf32>
    %12 = tpu.reciprocal %11 : vector<8x256xf32> -> vector<8x256xf32>
    %cst_5 = arith.constant 0.000000e+00 : f32
    %13 = vector.broadcast %cst_5 : f32 to vector<8x256xf32>
    %14 = arith.cmpf oge, %3, %13 : vector<8x256xf32>
    %15 = arith.mulf %8, %12 : vector<8x256xf32>
    %16 = arith.select %14, %12, %15 : vector<8x256xi1>, vector<8x256xf32>
    %c0_6 = arith.constant 0 : index
    %c0_7 = arith.constant 0 : index
    %17 = vector.load %arg4[%c0_6, %c0_7] : memref<8x256xf32, #tpu.memory_space<vmem>>, vector<8x256xf32>
    %cst_8 = arith.constant 0.000000e+00 : f32
    %18 = vector.broadcast %cst_8 : f32 to vector<8x256xf32>
    %19 = arith.maximumf %3, %18 : vector<8x256xf32>
    %20 = arith.mulf %3, %4 : vector<8x256xf32>
    %21 = arith.subf %19, %20 : vector<8x256xf32>
    %22 = arith.addf %21, %9 : vector<8x256xf32>
    %23 = arith.addf %17, %22 : vector<8x256xf32>
    %c0_9 = arith.constant 0 : index
    %c0_10 = arith.constant 0 : index
    %24 = vector.load %arg4[%c0_9, %c0_10] : memref<8x256xf32, #tpu.memory_space<vmem>>, vector<8x256xf32>
    tpu.vector_store %arg4[%c0_9, %c0_10], %23 {strides = array<i32>} : memref<8x256xf32, #tpu.memory_space<vmem>>, vector<8x256xf32>,
    %c0_11 = arith.constant 0 : index
    %c0_12 = arith.constant 0 : index
    %25 = vector.load %arg5[%c0_11, %c0_12] : memref<8x256xf32, #tpu.memory_space<vmem>>, vector<8x256xf32>
    %26 = arith.mulf %16, %4 : vector<8x256xf32>
    %27 = arith.addf %25, %26 : vector<8x256xf32>
    %c0_13 = arith.constant 0 : index
    %c0_14 = arith.constant 0 : index
    %28 = vector.load %arg5[%c0_13, %c0_14] : memref<8x256xf32, #tpu.memory_space<vmem>>, vector<8x256xf32>
    tpu.vector_store %arg5[%c0_13, %c0_14], %27 {strides = array<i32>} : memref<8x256xf32, #tpu.memory_space<vmem>>, vector<8x256xf32>,
    %c0_15 = arith.constant 0 : index
    %c0_16 = arith.constant 0 : index
    %29 = vector.load %arg6[%c0_15, %c0_16] : memref<8x256xf32, #tpu.memory_space<vmem>>, vector<8x256xf32>
    %30 = arith.addf %16, %4 : vector<8x256xf32>
    %31 = arith.addf %29, %30 : vector<8x256xf32>
    %c0_17 = arith.constant 0 : index
    %c0_18 = arith.constant 0 : index
    %32 = vector.load %arg6[%c0_17, %c0_18] : memref<8x256xf32, #tpu.memory_space<vmem>>, vector<8x256xf32>
    tpu.vector_store %arg6[%c0_17, %c0_18], %31 {strides = array<i32>} : memref<8x256xf32, #tpu.memory_space<vmem>>, vector<8x256xf32>,
    %c0_i32_19 = arith.constant 0 : i32
    %33 = arith.cmpi eq, %arg0, %c0_i32_19 : i32
    %34 = arith.extui %33 : i1 to i32
    %c0_i32_20 = arith.constant 0 : i32
    %35 = arith.cmpi ne, %34, %c0_i32_20 : i32
    scf.if %35 {
      %c0_21 = arith.constant 0 : index
      %c0_22 = arith.constant 0 : index
      %36 = vector.load %arg4[%c0_21, %c0_22] : memref<8x256xf32, #tpu.memory_space<vmem>>, vector<8x256xf32>
      %cst_23 = arith.constant dense<0.000000e+00> : vector<8xf32>
      %37 = vector.multi_reduction <add>, %36, %cst_23 [1] : vector<8x256xf32> to vector<8xf32>
      %38 = vector.shape_cast %37 : vector<8xf32> to vector<8x1xf32>
      %c0_24 = arith.constant 0 : index
      %c0_25 = arith.constant 0 : index
      %39 = vector.load %arg5[%c0_24, %c0_25] : memref<8x256xf32, #tpu.memory_space<vmem>>, vector<8x256xf32>
      %cst_26 = arith.constant dense<0.000000e+00> : vector<8xf32>
      %40 = vector.multi_reduction <add>, %39, %cst_26 [1] : vector<8x256xf32> to vector<8xf32>
      %41 = vector.shape_cast %40 : vector<8xf32> to vector<8x1xf32>
      %c0_27 = arith.constant 0 : index
      %c0_28 = arith.constant 0 : index
      %42 = vector.load %arg6[%c0_27, %c0_28] : memref<8x256xf32, #tpu.memory_space<vmem>>, vector<8x256xf32>
      %cst_29 = arith.constant dense<0.000000e+00> : vector<8xf32>
      %43 = vector.multi_reduction <add>, %42, %cst_29 [1] : vector<8x256xf32> to vector<8xf32>
      %44 = vector.shape_cast %43 : vector<8xf32> to vector<8x1xf32>
      %45 = vector.shape_cast %38 : vector<8x1xf32> to vector<1x8x1xf32>
      %cst_30 = arith.constant dense<0.000000e+00> : vector<1xf32>
      %46 = vector.multi_reduction <add>, %45, %cst_30 [1, 2] : vector<1x8x1xf32> to vector<1xf32>
      %47 = vector.shape_cast %46 : vector<1xf32> to vector<1x1x1xf32>
      %48 = vector.extract %47[0, 0, 0] : f32 from vector<1x1x1xf32>
      %cst_31 = arith.constant 2.048000e+03 : f32
      %49 = arith.divf %48, %cst_31 : f32
      %50 = vector.extract_strided_slice %41 {offsets = [0, 0], sizes = [4, 1], strides = [1, 1]} : vector<8x1xf32> to vector<4x1xf32>
      %51 = vector.shape_cast %50 : vector<4x1xf32> to vector<1x4x1xf32>
      %cst_32 = arith.constant dense<0.000000e+00> : vector<1xf32>
      %52 = vector.multi_reduction <add>, %51, %cst_32 [1, 2] : vector<1x4x1xf32> to vector<1xf32>
      %53 = vector.shape_cast %52 : vector<1xf32> to vector<1x1x1xf32>
      %54 = vector.extract %53[0, 0, 0] : f32 from vector<1x1x1xf32>
      %55 = vector.extract_strided_slice %44 {offsets = [0, 0], sizes = [4, 1], strides = [1, 1]} : vector<8x1xf32> to vector<4x1xf32>
      %56 = vector.shape_cast %55 : vector<4x1xf32> to vector<1x4x1xf32>
      %cst_33 = arith.constant dense<0.000000e+00> : vector<1xf32>
      %57 = vector.multi_reduction <add>, %56, %cst_33 [1, 2] : vector<1x4x1xf32> to vector<1xf32>
      %58 = vector.shape_cast %57 : vector<1xf32> to vector<1x1x1xf32>
      %59 = vector.extract %58[0, 0, 0] : f32 from vector<1x1x1xf32>
      %cst_34 = arith.constant 2.000000e+00 : f32
      %60 = arith.mulf %cst_34, %54 : f32
      %cst_35 = arith.constant 9.99999997E-7 : f32
      %61 = arith.addf %60, %cst_35 : f32
      %cst_36 = arith.constant 9.99999997E-7 : f32
      %62 = arith.addf %59, %cst_36 : f32
      %63 = arith.divf %61, %62 : f32
      %cst_37 = arith.constant 1.000000e+00 : f32
      %64 = arith.subf %cst_37, %63 : f32
      %cst_38 = arith.constant 0.000000e+00 : f32
      %65 = arith.addf %cst_38, %64 : f32
      %66 = vector.extract_strided_slice %41 {offsets = [4, 0], sizes = [4, 1], strides = [1, 1]} : vector<8x1xf32> to vector<4x1xf32>
      %67 = vector.shape_cast %66 : vector<4x1xf32> to vector<1x4x1xf32>
      %cst_39 = arith.constant dense<0.000000e+00> : vector<1xf32>
      %68 = vector.multi_reduction <add>, %67, %cst_39 [1, 2] : vector<1x4x1xf32> to vector<1xf32>
      %69 = vector.shape_cast %68 : vector<1xf32> to vector<1x1x1xf32>
      %70 = vector.extract %69[0, 0, 0] : f32 from vector<1x1x1xf32>
      %71 = vector.extract_strided_slice %44 {offsets = [4, 0], sizes = [4, 1], strides = [1, 1]} : vector<8x1xf32> to vector<4x1xf32>
      %72 = vector.shape_cast %71 : vector<4x1xf32> to vector<1x4x1xf32>
      %cst_40 = arith.constant dense<0.000000e+00> : vector<1xf32>
      %73 = vector.multi_reduction <add>, %72, %cst_40 [1, 2] : vector<1x4x1xf32> to vector<1xf32>
      %74 = vector.shape_cast %73 : vector<1xf32> to vector<1x1x1xf32>
      %75 = vector.extract %74[0, 0, 0] : f32 from vector<1x1x1xf32>
      %cst_41 = arith.constant 2.000000e+00 : f32
      %76 = arith.mulf %cst_41, %70 : f32
      %cst_42 = arith.constant 9.99999997E-7 : f32
      %77 = arith.addf %76, %cst_42 : f32
      %cst_43 = arith.constant 9.99999997E-7 : f32
      %78 = arith.addf %75, %cst_43 : f32
      %79 = arith.divf %77, %78 : f32
      %cst_44 = arith.constant 1.000000e+00 : f32
      %80 = arith.subf %cst_44, %79 : f32
      %81 = arith.addf %65, %80 : f32
      %cst_45 = arith.constant 2.000000e+00 : f32
      %82 = arith.divf %81, %cst_45 : f32
      %83 = arith.addf %49, %82 : f32
      %84 = vector.broadcast %83 : f32 to vector<1x1xf32>
      %c0_46 = arith.constant 0 : index
      %c0_47 = arith.constant 0 : index
      %85 = vector.load %arg3[%c0_46, %c0_47] : memref<1x1xf32, #tpu.memory_space<vmem>>, vector<1x1xf32>
      tpu.vector_store %arg3[%c0_46, %c0_47], %84 {strides = array<i32>} : memref<1x1xf32, #tpu.memory_space<vmem>>, vector<1x1xf32>,
    } else {
    }
    return
  }
  func.func @transform_0(%arg0: i32) -> (i32, i32) {
    %c0_i32 = arith.constant 0 : i32
    %c0_i32_0 = arith.constant 0 : i32
    return %c0_i32, %arg0 : i32, i32
  }
  func.func @transform_1(%arg0: i32) -> (i32, i32) {
    %c0_i32 = arith.constant 0 : i32
    %c0_i32_0 = arith.constant 0 : i32
    return %c0_i32, %arg0 : i32, i32
  }
  func.func @transform_2(%arg0: i32) -> (i32, i32) {
    %c0_i32 = arith.constant 0 : i32
    %c0_i32_0 = arith.constant 0 : i32
    %c0_i32_1 = arith.constant 0 : i32
    return %c0_i32, %c0_i32_0 : i32, i32
  }
}

</mosaic_0001>

<bundles_post_ra>
// kernel: tpu_custom_call.1
= control target key start
LH: loop header
LB: loop body
LE: loop exit
PB: predicated region body
PF: predicated region fallthrough
CT: control target
= control target key end

     0   :  { %7 = vsyncpa [#allocation6], 0  ;;  %s398_s0 = inlined_call_operand.hbm [shape: f32[8,256], index: 0, kind: input, shape index: {}]   ;;  %s399_s1 = inlined_call_operand.hbm [shape: f32[8,256], index: 1, kind: input, shape index: {}]   ;;  %s400_s2 = inlined_call_operand.hbm [shape: f32[1,1], index: 2, kind: output, shape index: {}]  }
   0x1   :  { %8 = vsyncpa [#allocation9], 0 }
   0x2   :  { %9 = vsyncpa [#allocation7], 0  ;;  %s341_s9 = smov [#allocation5]   ;;  %s342_s11 = smov [#allocation8]  }
   0x3   :  { %s16_s10 = sshll.u32 %s341_s9, 4  ;;  %s26_s12 = sshll.u32 %s342_s11, 4  ;;  %s17_s10 = int_to_ptr.vmem [resolvable:$true] %s16_s10  ;;  %s27_s12 = int_to_ptr.vmem [resolvable:$true] %s26_s12 }
   0x4   :  { %s269_s15 = scalar_lea.hbm %s398_s0, 256 }
   0x5   :  { %p270_p0 = scmp.ne.s32.totalorder %s398_s0, %s269_s15  ;;  %p273_p1 = scmp.lt.u32.totalorder %s269_s15, %s398_s0 }
   0x7   :  { %p275_p2 = pnand %p273_p1, %p270_p0 }
   0x9   :  { %278 = shalt.err (!%p275_p2)
}
   0xa   :  { %s279_s20 = scalar_lea.vmem %s17_s10, 256  ;;  %p284_p4 = scmp.lt.s32.totalorder %s17_s10, %s17_s10 }
   0xb   :  { %p280_p3 = scmp.ne.s32.totalorder %s17_s10, %s279_s20  ;;  %p285_p5 = scmp.lt.s32.totalorder %s279_s20, %s279_s20 }
   0xd   :  { %p286_p6 = por %p285_p5, %p284_p4 }
   0xf   :  { %p287_p7 = pnand %p286_p6, %p280_p3 }
  0x11   :  { %290 = shalt.err (!%p287_p7)
}
  0x12   :  { %19 = dma.hbm_to_vmem [thread:$0]  %s398_s0, 256, %s17_s10, [#allocation6]  }
  0x13   :  { %s291_s25 = scalar_lea.hbm %s399_s1, 256 }
  0x14   :  { %p292_p8 = scmp.ne.s32.totalorder %s399_s1, %s291_s25  ;;  %p295_p9 = scmp.lt.u32.totalorder %s291_s25, %s399_s1 }
  0x16   :  { %p297_p10 = pnand %p295_p9, %p292_p8 }
  0x18   :  { %300 = shalt.err (!%p297_p10)
}
  0x19   :  { %s301_s30 = scalar_lea.vmem %s27_s12, 256  ;;  %p306_p12 = scmp.lt.s32.totalorder %s27_s12, %s27_s12 }
  0x1a   :  { %p302_p11 = scmp.ne.s32.totalorder %s27_s12, %s301_s30  ;;  %p307_p13 = scmp.lt.s32.totalorder %s301_s30, %s301_s30 }
  0x1c   :  { %p308_p0 = por %p307_p13, %p306_p12 }
  0x1e   :  { %p309_p1 = pnand %p308_p0, %p302_p11 }
  0x20   :  { %312 = shalt.err (!%p309_p1)
}
  0x21   :  { %29 = dma.hbm_to_vmem [thread:$0]  %s399_s1, 256, %s27_s12, [#allocation9]  }
  0x22   :  { %335 = dma.done.wait [#allocation6], 256  }
  0x23   :  { %336 = vsyncadd [#allocation6], 4294967040 }
  0x24   :  { %337 = dma.done.wait [#allocation9], 256  }
  0x25   :  { %338 = vsyncadd [#allocation9], 4294967040  ;;  %v46_v0 = vld [vmem:[#allocation5] sm:$0xff]  ;;  %v47_v1 = vld [vmem:[#allocation5 + $0x8] sm:$0xff]  ;;  %vm134_vm4 = vcmask 7168   ;;  %vm148_vm5 = vcmask 3072  }
  0x26   :  { %v50_v2 = vand.u32 2147483647, %v46_v0  ;;  %v51_v3 = vand.u32 2147483647, %v47_v1  ;;  %v48_v14 = vld [vmem:[#allocation8] sm:$0xff]  ;;  %v49_v15 = vld [vmem:[#allocation8 + $0x8] sm:$0xff] }
  0x27   :  { %v88_v19 = vmax.f32 %v46_v0, 0.0  ;;  %v90_v20 = vmul.f32 %v48_v14, %v46_v0  ;;  %v89_v22 = vmax.f32 %v47_v1, 0.0  ;;  %v91_v23 = vmul.f32 %v49_v15, %v47_v1  ;;  %s343_s23 = smov [#allocation10]  }
  0x28   :  { %v52_v4 = vsub.f32 0.0, %v50_v2  ;;  %v53_v5 = vsub.f32 0.0, %v51_v3  ;;  %vm80_vm2 = vcmp.ge.f32.partialorder %v46_v0, 0.0  ;;  %vm81_vm3 = vcmp.ge.f32.partialorder %v47_v1, 0.0  ;;  %s226_s24 = sshll.u32 %s343_s23, 4  ;;  %s227_s24 = int_to_ptr.vmem [resolvable:$true] %s226_s24 }
  0x29   :  { %v92_v27 = vsub.f32 %v88_v19, %v90_v20  ;;  %v93_v30 = vsub.f32 %v89_v22, %v91_v23  ;;  %vm218_vm6 = vcmask 0   ;;  %s313_s26 = scalar_lea.vmem %s227_s24, 16  ;;  %s317_s27 = scalar_lea.vmem %s227_s24, 32 }
  0x2a   :  { %v54_v6 = vmul.f32 1.442695, %v52_v4  ;;  %v56_v7 = vmul.f32 1.442695, %v53_v5  ;;  %p314_p2 = scmp.ne.s32.totalorder %s227_s24, %s313_s26  ;;  %p318_p3 = scmp.lt.s32.totalorder %s227_s24, %s227_s24 }
  0x2b   :  { %p319_p4 = scmp.lt.s32.totalorder %s317_s27, %s313_s26 }
  0x2c   :  { %253 = vpow2.f32 %v54_v6 }
  0x2d   :  { %255 = vpow2.f32 %v56_v7  ;;  %p320_p5 = por %p319_p4, %p318_p3 }
  0x2f   :  { %p321_p6 = pnand %p320_p5, %p314_p2 }
  0x36   :  { %v254_v8 = vpop.eup %253 }
  0x37   :  { %v256_v9 = vpop.eup %255  ;;  %v58_v10 = vadd.f32 1.0, %v254_v8  ;;  %v61_v12 = vmul.f32 -0.5, %v254_v8  ;;  %v64_v17 = vand.u32 2147483647, %v254_v8 }
  0x38   :  { %v67_v11 = vadd.f32 1.0, %v256_v9  ;;  %v70_v13 = vmul.f32 -0.5, %v256_v9  ;;  %v73_v21 = vand.u32 2147483647, %v256_v9 }
  0x39   :  { %257 = vlog2.f32 %v58_v10  ;;  %v62_v16 = vadd.f32 1.0, %v61_v12  ;;  %vm65_vm0 = vcmp.lt.f32.partialorder %v64_v17, 0.0004427343 }
  0x3a   :  { %259 = vlog2.f32 %v67_v11  ;;  %v71_v18 = vadd.f32 1.0, %v70_v13  ;;  %vm74_vm1 = vcmp.lt.f32.partialorder %v73_v21, 0.0004427343 }
  0x3b   :  { %261 = vrcp.f32 %v58_v10  ;;  %v63_v24 = vmul.f32 %v254_v8, %v62_v16 }
  0x3c   :  { %263 = vrcp.f32 %v67_v11  ;;  %v72_v26 = vmul.f32 %v256_v9, %v71_v18 }
  0x43   :  { %v258_v25 = vpop.eup %257 }
  0x44   :  { %v260_v28 = vpop.eup %259  ;;  %v60_v29 = vmul.f32 0.6931472, %v258_v25 }
  0x45   :  { %v262_v31 = vpop.eup %261  ;;  %v69_v32 = vmul.f32 0.6931472, %v260_v28 }
  0x46   :  { %v264_v33 = vpop.eup %263  ;;  %v66_v34 = vsel %vm65_vm0, %v63_v24, %v60_v29  ;;  %v82_v35 = vmul.f32 %v262_v31, %v254_v8 }
  0x47   :  { %v75_v36 = vsel %vm74_vm1, %v72_v26, %v69_v32  ;;  %v94_v37 = vadd.f32 %v92_v27, %v66_v34  ;;  %v83_v38 = vmul.f32 %v264_v33, %v256_v9 }
  0x48   :  { %v95_v39 = vadd.f32 %v93_v30, %v75_v36  ;;  %v84_v40 = vsel %vm80_vm2, %v262_v31, %v82_v35 }
  0x49   :  { %v85_v41 = vsel %vm81_vm3, %v264_v33, %v83_v38  ;;  %v110_v42 = vadd.f32 %v84_v40, %v48_v14  ;;  %v102_v43 = vmul.f32 %v84_v40, %v48_v14 }
  0x4a   :  { %v121_v44 = vadd.f32 %v95_v39, %v94_v37  ;;  %v111_v45 = vadd.f32 %v85_v41, %v49_v15  ;;  %v103_v46 = vmul.f32 %v85_v41, %v49_v15 }
  0x4c   :  { %122 = vadd.xlane.f32.xlu0 %v121_v44  ;;  %v131_v47 = vadd.f32 %v111_v45, %v110_v42  ;;  %v126_v48 = vadd.f32 %v103_v46, %v102_v43 }
  0x4e   :  { %132 = vadd.xlane.f32.xlu1 %v131_v47 }
  0x50   :  { %127 = vadd.xlane.f32.xlu0 %v126_v48 }
  0xd9   :  { %v123_v49 = vpop.xlane.xlu0 %122 }
  0xda   :  { %v135_v50 = vsel %vm134_vm4, %v123_v49, 0.0 }
  0xdb   :  { %136 = vadd.xlane.f32.xlu1 %v135_v50  ;;  %v133_v51 = vpop.xlane.xlu1 %132 }
  0xdc   :  { %v159_v52 = vsel %vm148_vm5, %v133_v51, 0.0  ;;  %v192_v54 = vrot.slane %v133_v51, 4 }
  0xdd   :  { %v128_v53 = vpop.xlane.xlu0 %127 }
  0xde   :  { %v179_v55 = vrot.slane %v128_v53, 4  ;;  %v149_v56 = vsel %vm148_vm5, %v128_v53, 0.0  ;;  %v194_v57 = vsel %vm148_vm5, %v192_v54, 0.0 }
  0xdf   :  { %160 = vadd.xlane.f32.xlu1 %v159_v52  ;;  %150 = vadd.xlane.f32.xlu0 %v149_v56 }
  0xe0   :  { %v181_v58 = vsel %vm148_vm5, %v179_v55, 0.0 }
  0xe3   :  { %195 = vadd.xlane.f32.xlu1 %v194_v57  ;;  %182 = vadd.xlane.f32.xlu0 %v181_v58 }
 0x168   :  { %v137_v59 = vpop.xlane.xlu1 %136 }
 0x169   :  { %v138_v60 = vrot.slane %v137_v59, 4 }
 0x16b   :  { %v139_v61 = vadd.f32 %v138_v60, %v137_v59 }
 0x16c   :  { %v161_v62 = vpop.xlane.xlu1 %160  ;;  %v151_v63 = vpop.xlane.xlu0 %150 }
 0x16d   :  { %v140_v0 = vrot.slane %v139_v61, 2  ;;  %v162_v1 = vrot.slane %v161_v62, 4  ;;  %v152_v2 = vrot.slane %v151_v63, 4 }
 0x16f   :  { %v163_v3 = vadd.f32 %v162_v1, %v161_v62  ;;  %v153_v4 = vadd.f32 %v152_v2, %v151_v63  ;;  %v141_v5 = vadd.f32 %v140_v0, %v139_v61 }
 0x170   :  { %v183_v16 = vpop.xlane.xlu0 %182  ;;  %v196_v17 = vpop.xlane.xlu1 %195 }
 0x171   :  { %v164_v6 = vrot.slane %v163_v3, 2  ;;  %v154_v7 = vrot.slane %v153_v4, 2  ;;  %v142_v8 = vrot.slane %v141_v5, 1  ;;  %v184_v18 = vrot.slane %v183_v16, 4 }
 0x172   :  { %v197_v19 = vrot.slane %v196_v17, 4 }
 0x173   :  { %v155_v9 = vadd.f32 %v154_v7, %v153_v4  ;;  %v165_v10 = vadd.f32 %v164_v6, %v163_v3  ;;  %v143_v11 = vadd.f32 %v142_v8, %v141_v5  ;;  %v185_v20 = vadd.f32 %v184_v18, %v183_v16 }
 0x174   :  { %v198_v21 = vadd.f32 %v197_v19, %v196_v17 }
 0x175   :  { %v156_v12 = vrot.slane %v155_v9, 1  ;;  %v166_v13 = vrot.slane %v165_v10, 1  ;;  %236 = vpush %v143_v11  ;;  %v186_v22 = vrot.slane %v185_v20, 2 }
 0x176   :  { %v199_v23 = vrot.slane %v198_v21, 2 }
 0x177   :  { %v157_v14 = vadd.f32 %v156_v12, %v155_v9  ;;  %v167_v15 = vadd.f32 %v166_v13, %v165_v10  ;;  %v187_v25 = vadd.f32 %v186_v22, %v185_v20 }
 0x178   :  { %v200_v26 = vadd.f32 %v199_v23, %v198_v21 }
 0x179   :  { %238 = vpush %v157_v14  ;;  %v188_v27 = vrot.slane %v187_v25, 1 }
 0x17a   :  { %240 = vpush %v167_v15  ;;  %v201_v28 = vrot.slane %v200_v26, 1 }
 0x17b   :  { %v189_v30 = vadd.f32 %v188_v27, %v187_v25 }
 0x17c   :  { %v202_v31 = vadd.f32 %v201_v28, %v200_v26 }
 0x1a6   :  { %s383_s1 = spop %236 }
 0x1a7   :  { %s147_s21 = smul.f32 0.00048828125, %s383_s1 }
 0x1aa   :  { %s239_s4 = spop %238 }
 0x1ab   :  { %s241_s5 = spop %240  ;;  %s169_s7 = smul.f32 2.0, %s239_s4 }
 0x1ac   :  { %s171_s6 = sadd.f32 1e-06, %s241_s5 }
 0x1ad   :  { %s170_s8 = sadd.f32 1e-06, %s169_s7 }
 0x1ae   :  { %v172_v24 = vstv %s171_s6 }
 0x1af   :  { %265 = vrcp.f32 %v172_v24 }
 0x1b9   :  { %v266_v29 = vpop.eup %265 }
 0x1ba   :  { %242 = vpush %v266_v29 }
 0x1bb   :  { %244 = vpush %v189_v30 }
 0x1bc   :  { %246 = vpush %v202_v31 }
 0x1eb   :  { %s243_s9 = spop %242 }
 0x1ec   :  { %s175_s10 = smul.f32 %s243_s9, %s170_s8  ;;  %s245_s11 = spop %244 }
 0x1ed   :  { %s247_s12 = spop %246  ;;  %s204_s14 = smul.f32 2.0, %s245_s11 }
 0x1ee   :  { %s206_s13 = sadd.f32 1e-06, %s247_s12 }
 0x1ef   :  { %s205_s15 = sadd.f32 1e-06, %s204_s14 }
 0x1f0   :  { %v207_v32 = vstv %s206_s13  ;;  %s176_s18 = ssub.f32 1.0, %s175_s10 }
 0x1f1   :  { %267 = vrcp.f32 %v207_v32 }
 0x1fb   :  { %v268_v33 = vpop.eup %267 }
 0x1fc   :  { %248 = vpush %v268_v33 }
 0x22d   :  { %s249_s16 = spop %248 }
 0x22e   :  { %s210_s17 = smul.f32 %s249_s16, %s205_s15 }
 0x230   :  { %s211_s19 = ssub.f32 1.0, %s210_s17 }
 0x232   :  { %s212_s20 = sadd.f32 %s211_s19, %s176_s18 }
 0x234   :  { %s215_s22 = smul.f32 0.5, %s212_s20 }
 0x236   :  { %s216_s25 = sadd.f32 %s215_s22, %s147_s21 }
 0x238   :  { %v217_v34 = vstv %s216_s25 }
 0x239   :  { %219 = vst.msk [vmem:[#allocation10] sm:$0x1] %vm218_vm6, %v217_v34 }
 0x23a   :  { %324 = shalt.err (!%p321_p6)
}
 0x23b   :  { %s325_s30 = scalar_lea.hbm %s400_s2, 16 }
 0x23c   :  { %p326_p7 = scmp.ne.s32.totalorder %s400_s2, %s325_s30  ;;  %p329_p8 = scmp.lt.u32.totalorder %s325_s30, %s400_s2 }
 0x23e   :  { %p331_p9 = pnand %p329_p8, %p326_p7 }
 0x240   :  { %334 = shalt.err (!%p331_p9)
}
 0x241   :  { %229 = dma.vmem_to_hbm [thread:$0]  %s227_s24, 16, %s400_s2, [#allocation7]  }
 0x242   :  { %339 = dma.done.wait [#allocation7], 16  }
 0x243   :  { %340 = vsyncadd [#allocation7], 4294967280 }
 0x244   :  { %233 = vsyncpa [#allocation6], 1 }
 0x245   :  { %234 = vsyncpa [#allocation9], 1 }
 0x246   :  { %235 = vsyncpa [#allocation7], 1 }

</bundles_post_ra>
